<compile_context>
chip_gen: v7x
topology: tpu7x:2x2x1
jax: 0.10.0
libtpu: 0.0.40
codegen_flags: <defaults>
</compile_context>

<pallas_src>
import jax
import jax.numpy as jnp
import numpy as np
from jax.experimental import pallas as pl
from jax.experimental.pallas import tpu as pltpu


# Standard JPEG luminance quantization table (transposed, matching the
# reference numpy init used for `y_table` in the PyTorch module).
_Y_TABLE_NP = np.array(
    [[16, 11, 10, 16, 24, 40, 51, 61],
     [12, 12, 14, 19, 26, 58, 60, 55],
     [14, 13, 16, 24, 40, 57, 69, 56],
     [14, 17, 22, 29, 51, 87, 80, 62],
     [18, 22, 37, 56, 68, 109, 103, 77],
     [24, 35, 55, 64, 81, 104, 113, 92],
     [49, 64, 78, 87, 103, 121, 120, 101],
     [72, 92, 95, 98, 112, 100, 103, 99]],
    dtype=np.float32).T

_TARGET_BLOCK_BYTES = 4 * 1024 * 1024   # ~4 MiB blocks (amortize per-step overhead)


def _round_up(x, m):
    return ((x + m - 1) // m) * m


def _y_dequantize_kernel(x_ref, tbl_ref, o_ref):
    # Pure elementwise hot path: (tile_rows, tile_n) * (1, tile_n) broadcast.
    # Table is already scaled by `factor`, kept in f32; product computed in f32
    # and cast to the output dtype (no-op for f32 inputs).
    x = x_ref[...].astype(jnp.float32)
    o_ref[...] = (x * tbl_ref[...]).astype(o_ref.dtype)


def _is_scalar_factor(factor):
    if np.isscalar(factor):
        return True
    shape = getattr(factor, "shape", None)
    if shape is None:
        return True
    return int(np.prod(shape)) <= 1


def y_dequantize(image, y_table, factor=1.0):
    """image: (B, L, 8, 8); returns image * (y_table * factor)."""
    B, L, H, W = image.shape
    assert (H, W) == (8, 8), "y_dequantize operates on 8x8 JPEG blocks"
    dtype = image.dtype
    itemsize = jnp.dtype(dtype).itemsize

    if not _is_scalar_factor(factor):
        # TODO(synk): per-sample factor (e.g. shape (B,1,1,1)) is not fused into
        # the Pallas kernel; plain-JAX broadcast keeps reference semantics.
        return image * (y_table.astype(jnp.float32)
                        * jnp.asarray(factor, jnp.float32)).astype(dtype)

    # Fold scalar `factor` into the table (tiny plain-JAX op; supports traced
    # factor, no recompile per value), flatten row-major to 64 entries.
    table_flat = (y_table.astype(jnp.float32)
                  * jnp.asarray(factor, jnp.float32)).reshape(-1)          # (64,)

    # ---- Choose a lane width that divides total exactly: NO pad / NO slice.
    total = B * L * 64
    for cand in (1024, 512, 256, 128):
        if total % cand == 0:
            tile_n = cand
            break
    else:
        # B*L odd: block last dim equals the full array dim (masked stores on
        # the lane tail, still correct and far cheaper than pad + slice).
        tile_n = 64

    rows = total // tile_n
    x2d = image.reshape(rows, tile_n)
    # One lane-dense table row holding tile_n/64 whole 8x8 blocks, matching the
    # row-major block layout of x2d.
    table_row = jnp.tile(table_flat, tile_n // 64).reshape(1, tile_n)

    # ---- Row tiling: ~4 MiB blocks, at least 2 (even) grid steps so both v7x
    # TensorCores get work; no-op on single-TC v5e/v6e.
    max_tile_rows = max(8, _TARGET_BLOCK_BYTES // (tile_n * itemsize))
    if rows <= 8:
        tile_rows = rows            # full extent (legal even when rows % 8 != 0)
    else:
        n_blocks = max(2, pl.cdiv(rows, max_tile_rows))
        if n_blocks % 2:
            n_blocks += 1
        tile_rows = _round_up(pl.cdiv(rows, n_blocks), 8)
    grid = (pl.cdiv(rows, tile_rows),)

    cost = pl.CostEstimate(
        flops=total,
        transcendentals=0,
        bytes_accessed=2 * total * itemsize + tile_n * 4,
    )

    out2d = pl.pallas_call(
        _y_dequantize_kernel,
        out_shape=jax.ShapeDtypeStruct((rows, tile_n), dtype),
        grid_spec=pltpu.PrefetchScalarGridSpec(
            num_scalar_prefetch=0,
            grid=grid,
            in_specs=[
                pl.BlockSpec((tile_rows, tile_n), lambda r: (r, 0)),
                pl.BlockSpec((1, tile_n), lambda r: (0, 0)),
            ],
            out_specs=pl.BlockSpec((tile_rows, tile_n), lambda r: (r, 0)),
        ),
        compiler_params=pltpu.CompilerParams(
            dimension_semantics=("parallel",),
            vmem_limit_bytes=32 * 1024 * 1024,
        ),
        cost_estimate=cost,
    )(x2d, table_row)

    return out2d.reshape(B, L, 8, 8)


if __name__ == "__main__":
    key = jax.random.PRNGKey(0)
    y_table = jnp.asarray(_Y_TABLE_NP)
    factor = 1.0

    # Primary case: B*L multiple of 16 -> tile_n = 1024 (full-width stores).
    B, L = 2, 16
    image = jax.random.normal(key, (B, L, 8, 8), dtype=jnp.float32) * 10.0
    out = jax.block_until_ready(y_dequantize(image, y_table, factor))
    ref = image * (y_table * factor)
    np.testing.assert_allclose(np.asarray(out), np.asarray(ref),
                               rtol=1e-6, atol=1e-6)

    # Odd B*L case: exercises the no-pad divisor fallback (tile_n = 64).
    image2 = jax.random.normal(jax.random.PRNGKey(1), (1, 3, 8, 8),
                               dtype=jnp.float32) * 10.0
    out2 = jax.block_until_ready(y_dequantize(image2, y_table, 2.0))
    ref2 = image2 * (y_table * 2.0)
    np.testing.assert_allclose(np.asarray(out2), np.asarray(ref2),
                               rtol=1e-6, atol=1e-6)

    print("KERNEL_OK")
</pallas_src>

<mosaic_0001>
module attributes {stable_mosaic.version = 11 : i64} {
  func.func @_y_dequantize_kernel(%arg0: i32, %arg1: memref<2x1024xf32, #tpu.memory_space<vmem>>, %arg2: memref<1x1024xf32, #tpu.memory_space<vmem>>, %arg3: memref<2x1024xf32, #tpu.memory_space<vmem>>) attributes {dimension_semantics = [#tpu.dimension_semantics<parallel>], iteration_bounds = array<i64: 1>, scalar_prefetch = 0 : i64, scratch_operands = 0 : i64, tpu.core_type = #tpu.core_type<tc>, window_params = [{transform_indices = @transform_0, window_bounds = array<i64: 2, 1024>}, {pipeline_mode = #tpu.pipeline_mode<synchronous>, transform_indices = @transform_1, window_bounds = array<i64: 1, 1024>}, {transform_indices = @transform_2, window_bounds = array<i64: 2, 1024>}]} {
    %c0 = arith.constant 0 : index
    %c0_0 = arith.constant 0 : index
    %0 = vector.load %arg1[%c0, %c0_0] : memref<2x1024xf32, #tpu.memory_space<vmem>>, vector<2x1024xf32>
    %c0_1 = arith.constant 0 : index
    %c0_2 = arith.constant 0 : index
    %1 = vector.load %arg2[%c0_1, %c0_2] : memref<1x1024xf32, #tpu.memory_space<vmem>>, vector<1x1024xf32>
    %2 = vector.broadcast %1 : vector<1x1024xf32> to vector<2x1024xf32>
    %3 = arith.mulf %0, %2 : vector<2x1024xf32>
    %c0_3 = arith.constant 0 : index
    %c0_4 = arith.constant 0 : index
    %4 = vector.load %arg3[%c0_3, %c0_4] : memref<2x1024xf32, #tpu.memory_space<vmem>>, vector<2x1024xf32>
    tpu.vector_store %arg3[%c0_3, %c0_4], %3 {strides = array<i32>} : memref<2x1024xf32, #tpu.memory_space<vmem>>, vector<2x1024xf32>,
    return
  }
  func.func @transform_0(%arg0: i32) -> (i32, i32) {
    %c0_i32 = arith.constant 0 : i32
    %c0_i32_0 = arith.constant 0 : i32
    return %arg0, %c0_i32 : i32, i32
  }
  func.func @transform_1(%arg0: i32) -> (i32, i32) {
    %c0_i32 = arith.constant 0 : i32
    %c0_i32_0 = arith.constant 0 : i32
    %c0_i32_1 = arith.constant 0 : i32
    return %c0_i32, %c0_i32_0 : i32, i32
  }
  func.func @transform_2(%arg0: i32) -> (i32, i32) {
    %c0_i32 = arith.constant 0 : i32
    %c0_i32_0 = arith.constant 0 : i32
    return %arg0, %c0_i32 : i32, i32
  }
}

</mosaic_0001>

<bundles_post_ra>
// kernel: tpu_custom_call.1
= control target key start
LH: loop header
LB: loop body
LE: loop exit
PB: predicated region body
PF: predicated region fallthrough
CT: control target
= control target key end

     0   :  { %7 = vsyncpa [#allocation3], 0  ;;  %s259_s0 = inlined_call_operand.hbm [shape: f32[2,1024], index: 0, kind: input, shape index: {}]   ;;  %s260_s1 = inlined_call_operand.hbm [shape: f32[1,1024], index: 1, kind: input, shape index: {}]   ;;  %s261_s2 = inlined_call_operand.hbm [shape: f32[2,1024], index: 2, kind: output, shape index: {}]  }
   0x1   :  { %8 = vsyncpa [#allocation6], 0 }
   0x2   :  { %9 = vsyncpa [#allocation4], 0  ;;  %s204_s9 = smov [#allocation2]   ;;  %s205_s11 = smov [#allocation5]  }
   0x3   :  { %s16_s10 = sshll.u32 %s204_s9, 4  ;;  %s26_s12 = sshll.u32 %s205_s11, 4  ;;  %s17_s10 = int_to_ptr.vmem [resolvable:$true] %s16_s10  ;;  %s27_s12 = int_to_ptr.vmem [resolvable:$true] %s26_s12 }
   0x4   :  { %s132_s15 = scalar_lea.hbm %s259_s0, 256 }
   0x5   :  { %p133_p0 = scmp.ne.s32.totalorder %s259_s0, %s132_s15  ;;  %p136_p1 = scmp.lt.u32.totalorder %s132_s15, %s259_s0 }
   0x7   :  { %p138_p2 = pnand %p136_p1, %p133_p0 }
   0x9   :  { %141 = shalt.err (!%p138_p2)
}
   0xa   :  { %s142_s20 = scalar_lea.vmem %s17_s10, 256  ;;  %p147_p4 = scmp.lt.s32.totalorder %s17_s10, %s17_s10 }
   0xb   :  { %p143_p3 = scmp.ne.s32.totalorder %s17_s10, %s142_s20  ;;  %p148_p5 = scmp.lt.s32.totalorder %s142_s20, %s142_s20 }
   0xd   :  { %p149_p6 = por %p148_p5, %p147_p4 }
   0xf   :  { %p150_p7 = pnand %p149_p6, %p143_p3 }
  0x11   :  { %153 = shalt.err (!%p150_p7)
}
  0x12   :  { %19 = dma.hbm_to_vmem [thread:$0]  %s259_s0, 256, %s17_s10, [#allocation3]  }
  0x13   :  { %s154_s25 = scalar_lea.hbm %s260_s1, 128 }
  0x14   :  { %p155_p8 = scmp.ne.s32.totalorder %s260_s1, %s154_s25  ;;  %p158_p9 = scmp.lt.u32.totalorder %s154_s25, %s260_s1 }
  0x16   :  { %p160_p10 = pnand %p158_p9, %p155_p8 }
  0x18   :  { %163 = shalt.err (!%p160_p10)
}
  0x19   :  { %s164_s30 = scalar_lea.vmem %s27_s12, 128  ;;  %p169_p12 = scmp.lt.s32.totalorder %s27_s12, %s27_s12 }
  0x1a   :  { %p165_p11 = scmp.ne.s32.totalorder %s27_s12, %s164_s30  ;;  %p170_p13 = scmp.lt.s32.totalorder %s164_s30, %s164_s30 }
  0x1c   :  { %p171_p0 = por %p170_p13, %p169_p12 }
  0x1e   :  { %p172_p1 = pnand %p171_p0, %p165_p11 }
  0x20   :  { %175 = shalt.err (!%p172_p1)
}
  0x21   :  { %29 = dma.hbm_to_vmem [thread:$0]  %s260_s1, 128, %s27_s12, [#allocation6]  }
  0x22   :  { %198 = dma.done.wait [#allocation3], 256  }
  0x23   :  { %199 = vsyncadd [#allocation3], 4294967040 }
  0x24   :  { %200 = dma.done.wait [#allocation6], 128  }
  0x25   :  { %201 = vsyncadd [#allocation6], 4294967168  ;;  %v40_v0 = vlaneseq  ;;  %v206_v1 = vmov 1983009808   ;;  %v38_v13 = vld [vmem:[#allocation5] sm:$0xff]  ;;  %v36_v29 = vld [vmem:[#allocation2] sm:$0xff] }
  0x26   :  { %v75_v2 = vunpack.c.l.s4 %v206_v1  ;;  %v37_v33 = vld [vmem:[#allocation2 + $0x8] sm:$0xff]  ;;  %s207_s1 = smov [#allocation7]  }
  0x27   :  { %v41_v3 = vshrl.u32 %v40_v0, 7  ;;  %s118_s4 = sshll.u32 %s207_s1, 4  ;;  %s119_s4 = int_to_ptr.vmem [resolvable:$true] %s118_s4 }
  0x28   :  { %v76_v4 = vunpack.c.0.s8 %v75_v2  ;;  %s176_s5 = scalar_lea.vmem %s119_s4, 256  ;;  %p181_p3 = scmp.lt.s32.totalorder %s119_s4, %s119_s4 }
  0x29   :  { %v42_v5 = vsub.s32 0, %v41_v3  ;;  %v46_v6 = vsub.s32 1, %v41_v3  ;;  %v50_v7 = vsub.s32 2, %v41_v3  ;;  %v54_v8 = vsub.s32 3, %v41_v3  ;;  %p177_p2 = scmp.ne.s32.totalorder %s119_s4, %s176_s5  ;;  %p182_p4 = scmp.lt.s32.totalorder %s176_s5, %s176_s5 }
  0x2a   :  { %v58_v9 = vsub.s32 4, %v41_v3  ;;  %v62_v10 = vsub.s32 5, %v41_v3  ;;  %v66_v11 = vsub.s32 6, %v41_v3  ;;  %v70_v12 = vsub.s32 7, %v41_v3 }
  0x2b   :  { %v79_v14 = vsub.s32 %v76_v4, %v41_v3  ;;  %v43_v15 = vrot.slane %v38_v13, %v42_v5  ;;  %v47_v16 = vrot.slane %v38_v13, %v46_v6  ;;  %v51_v17 = vrot.slane %v38_v13, %v50_v7  ;;  %p183_p5 = por %p182_p4, %p181_p3 }
  0x2c   :  { %v55_v18 = vrot.slane %v38_v13, %v54_v8  ;;  %v59_v19 = vrot.slane %v38_v13, %v58_v9  ;;  %v63_v20 = vrot.slane %v38_v13, %v62_v10  ;;  %v67_v21 = vrot.slane %v38_v13, %v66_v11 }
  0x2d   :  { %v71_v22 = vrot.slane %v38_v13, %v70_v12  ;;  %v72_v23 = vcombine.low %v43_v15, %v47_v16  ;;  %p184_p6 = pnand %p183_p5, %p177_p2 }
  0x2e   :  { %v73_v24 = vcombine.low %v51_v17, %v55_v18  ;;  %v89_v25 = vcombine.low %v59_v19, %v63_v20 }
  0x2f   :  { %v90_v26 = vcombine.low %v67_v21, %v71_v22  ;;  %v80_v27 = vrot.slane %v72_v23, %v79_v14 }
  0x30   :  { %v87_v28 = vrot.slane %v73_v24, %v79_v14  ;;  %v97_v30 = vrot.slane %v89_v25, %v79_v14 }
  0x31   :  { %v104_v31 = vrot.slane %v90_v26, %v79_v14 }
  0x32   :  { %v88_v32 = vcombine.low %v80_v27, %v87_v28 }
  0x33   :  { %v105_v34 = vcombine.low %v97_v30, %v104_v31 }
  0x34   :  { %v108_v35 = vmul.f32 %v88_v32, %v36_v29 }
  0x35   :  { %v109_v36 = vmul.f32 %v105_v34, %v37_v33 }
  0x36   :  { %110 = vst [vmem:[#allocation7] sm:$0xff] %v108_v35 }
  0x37   :  { %111 = vst [vmem:[#allocation7 + $0x8] sm:$0xff] %v109_v36 }
  0x38   :  { %187 = shalt.err (!%p184_p6)
}
  0x39   :  { %s188_s8 = scalar_lea.hbm %s261_s2, 256 }
  0x3a   :  { %p189_p7 = scmp.ne.s32.totalorder %s261_s2, %s188_s8  ;;  %p192_p8 = scmp.lt.u32.totalorder %s188_s8, %s261_s2 }
  0x3c   :  { %p194_p9 = pnand %p192_p8, %p189_p7 }
  0x3e   :  { %197 = shalt.err (!%p194_p9)
}
  0x3f   :  { %121 = dma.vmem_to_hbm [thread:$0]  %s119_s4, 256, %s261_s2, [#allocation4]  }
  0x40   :  { %202 = dma.done.wait [#allocation4], 256  }
  0x41   :  { %203 = vsyncadd [#allocation4], 4294967040 }
  0x42   :  { %125 = vsyncpa [#allocation3], 1 }
  0x43   :  { %126 = vsyncpa [#allocation6], 1 }
  0x44   :  { %127 = vsyncpa [#allocation4], 1 }

</bundles_post_ra>
